<compile_context>
chip_gen: v7x
topology: tpu7x:2x2x1
jax: 0.10.0
libtpu: 0.0.40
codegen_flags: <defaults>
</compile_context>

<pallas_src>
import functools

import jax
import jax.numpy as jnp
from jax.experimental import pallas as pl
from jax.experimental.pallas import tpu as pltpu


def _round_up(a, b):
    return -(-a // b) * b


def _tpu_generation():
    try:
        kind = jax.devices()[0].device_kind.lower()
    except Exception:
        return None
    if "v7" in kind:
        return 7
    if "v6" in kind:
        return 6
    if "v5" in kind:
        return 5
    return None


def _choose_p_block(P, hw, sub):
    """Smallest P-axis block (multiple of `sub`) that contains the last-hw-rows
    window entirely inside a single block, so the BlockSpec DMAs only that block.
    Returns (block_p, p_block_index, in_block_offset)."""
    if hw >= P:
        return P, 0, 0
    start = P - hw
    bp = _round_up(hw, sub)
    while bp < P:
        q = start // bp
        if (P - 1) // bp == q:
            return bp, q, start - q * bp
        bp += sub
    return P, 0, start  # degenerate: whole P extent


def _ar_kernel(x_ref, w_ref, b_ref, o_ref, *, off, hw, output_fun):
    # x_ref: (bt, block_p, bm) VMEM (input dtype)
    # w_ref: (hw,) f32 SMEM    b_ref: (1,) f32 SMEM    o_ref: (bt, bm)
    # Unrolled scalar-broadcast FMA chain over the hw window rows; two partial
    # accumulators break the serial VALU dependency (hw is small & static).
    acc0 = x_ref[:, off, :].astype(jnp.float32) * w_ref[0]
    acc1 = jnp.zeros_like(acc0)
    for k in range(1, hw):
        term = x_ref[:, off + k, :].astype(jnp.float32) * w_ref[k]
        if k % 2:
            acc1 = acc1 + term
        else:
            acc0 = acc0 + term
    z = acc0 + acc1 + b_ref[0]
    if output_fun == "sigmoid":
        z = jax.nn.sigmoid(z)
    elif output_fun == "tanh":
        z = jnp.tanh(z)
    o_ref[...] = z.astype(o_ref.dtype)


def ar_forward(x, weight, bias, hw, *, output_fun="sigmoid", batch_tile=None):
    """x: (B, P, m); weight: (1, hw) [nn.Linear(hw,1).weight]; bias: (1,)."""
    B, P, m = x.shape
    assert 0 < hw <= P
    out_dtype = x.dtype
    itemsize = jnp.dtype(x.dtype).itemsize

    # --- per-generation VMEM budgets / buffering -----------------------------
    gen = _tpu_generation()
    if gen == 7:
        # v7x: 3.2 TB/s HBM, 64 MiB VMEM -> bigger per-step tiles + 3-deep input
        # buffering, but stay inside the 32 MiB scoped limit.
        per_buf_budget, n_buf, vmem_limit = 8 << 20, 3, 32 << 20
    elif gen == 6:
        # v6e: 128 MiB VMEM, extra headroom is cheap.
        per_buf_budget, n_buf, vmem_limit = 12 << 20, 2, 64 << 20
    else:
        # v5e / unknown: conservative 2 x 6 MiB input buffers, explicit 32 MiB
        # limit (v5e scoped default is only 16 MiB).
        per_buf_budget, n_buf, vmem_limit = 6 << 20, 2, 32 << 20

    # --- how x[:, -hw:, :] reaches the kernel --------------------------------
    # Sublane packing factor: f32 -> 8, bf16 -> 16, int8 -> 32.
    sub = 8 * max(1, 4 // itemsize)
    block_p, p_blk, off = _choose_p_block(P, hw, sub)
    if block_p > 3 * hw:
        # Best aligned block still over-reads a lot: materialize the window in the
        # wrapper (read hw + write hw + kernel read hw ~ 3x window bytes, always
        # cheaper than block_p/hw in this branch and far cheaper than P/hw).
        # TODO(synk): a manual strided make_async_copy (memory_space=pl.ANY) of
        #             only the hw rows would bring this down to 1x window bytes.
        x_in = x[:, P - hw:, :]
        block_p, p_blk, off = hw, 0, 0
    else:
        x_in = x

    # --- m-axis tiling: keep the batch tile >= 8 sublanes for dense stores ----
    block_m = m
    if m > 128 and m % 128 == 0:
        if per_buf_budget // (block_p * block_m * itemsize) < 8:
            bm = (per_buf_budget // (block_p * itemsize * 8)) // 128 * 128
            block_m = int(min(m, max(128, bm)))

    # --- batch tile -----------------------------------------------------------
    if batch_tile is None:
        bt = max(1, per_buf_budget // (block_p * block_m * itemsize))
        bt = int(min(bt, B))
        if gen == 7 and B >= 16:
            # Keep >= ~4 grid steps so ("parallel", ...) can shard the batch axis
            # across both v7x TensorCores.
            bt = min(bt, _round_up(pl.cdiv(B, 4), 8))
        if bt >= 8:
            bt = (bt // 8) * 8
        batch_tile = bt
    batch_tile = int(min(batch_tile, B))
    grid = (pl.cdiv(B, batch_tile), pl.cdiv(m, block_m))

    w_vec = weight.reshape(hw).astype(jnp.float32)   # SMEM scalars
    b_vec = bias.reshape(1).astype(jnp.float32)

    kernel = functools.partial(_ar_kernel, off=off, hw=hw, output_fun=output_fun)

    x_spec_kwargs = {}
    if gen == 7 and n_buf > 2:
        # Compute per step is ~zero: a third input buffer hides the per-step DMA
        # issue/wait bubble on v7x's short (~2us) steps.
        x_spec_kwargs["pipeline_mode"] = pl.Buffered(n_buf)

    cost = pl.CostEstimate(
        flops=2 * B * hw * m,
        transcendentals=(B * m) if output_fun in ("sigmoid", "tanh") else 0,
        bytes_accessed=B * block_p * m * itemsize
        + B * m * jnp.dtype(out_dtype).itemsize
        + 4 * hw + 4,
    )

    return pl.pallas_call(
        kernel,
        out_shape=jax.ShapeDtypeStruct((B, m), out_dtype),
        grid=grid,
        in_specs=[
            pl.BlockSpec((batch_tile, block_p, block_m),
                         lambda i, j: (i, p_blk, j), **x_spec_kwargs),
            pl.BlockSpec(memory_space=pltpu.SMEM),   # weight (hw,)
            pl.BlockSpec(memory_space=pltpu.SMEM),   # bias (1,)
        ],
        out_specs=pl.BlockSpec((batch_tile, block_m), lambda i, j: (i, j)),
        compiler_params=pltpu.CompilerParams(
            dimension_semantics=("parallel", "parallel"),
            vmem_limit_bytes=vmem_limit,
        ),
        cost_estimate=cost,
    )(x_in, w_vec, b_vec)


def reference_forward(x, weight, bias, hw, output_fun="sigmoid"):
    B, P, m = x.shape
    z = x[:, P - hw:, :]                                  # (B, hw, m)
    z = jnp.transpose(z, (0, 2, 1)).reshape(-1, hw)       # (B*m, hw)
    z = z.astype(jnp.float32) @ weight.astype(jnp.float32).T + bias.astype(jnp.float32)
    z = z.reshape(B, m)
    if output_fun == "sigmoid":
        z = jax.nn.sigmoid(z)
    elif output_fun == "tanh":
        z = jnp.tanh(z)
    return z.astype(x.dtype)


if __name__ == "__main__":
    key = jax.random.PRNGKey(0)
    # Small shapes (m = 128 keeps loads/stores lane-dense).  The three configs
    # exercise: (a) aligned window-only DMA, (b) wrapper-slice fallback,
    # (c) full-P block with a non-zero in-kernel window offset.
    configs = [
        (4, 16, 128, 8, "sigmoid"),
        (4, 23, 128, 2, "tanh"),
        (5, 20, 128, 8, "linear"),
    ]
    for idx, (B, P, m, hw, fn) in enumerate(configs):
        kx, kw, kb = jax.random.split(jax.random.fold_in(key, idx), 3)
        x = jax.random.normal(kx, (B, P, m), dtype=jnp.float32)

        # Deterministic init for nn.Linear(hw, 1): weight (1, hw), bias (1,)
        bound = 1.0 / float(hw) ** 0.5
        weight = jax.random.uniform(kw, (1, hw), minval=-bound, maxval=bound,
                                    dtype=jnp.float32)
        bias = jax.random.uniform(kb, (1,), minval=-bound, maxval=bound,
                                  dtype=jnp.float32)

        out = jax.block_until_ready(ar_forward(x, weight, bias, hw, output_fun=fn))
        ref = reference_forward(x, weight, bias, hw, output_fun=fn)

        assert out.shape == (B, m)
        assert out.dtype == x.dtype
        assert jnp.allclose(out, ref, atol=1e-5, rtol=1e-5), (
            idx, float(jnp.max(jnp.abs(out - ref))))

    print("KERNEL_OK")
</pallas_src>

<mosaic_0001>
module attributes {stable_mosaic.version = 11 : i64} {
  func.func @_ar_kernel(%arg0: i32, %arg1: i32, %arg2: memref<4x8x128xf32, #tpu.memory_space<vmem>>, %arg3: memref<8xf32, #tpu.memory_space<smem>>, %arg4: memref<1xf32, #tpu.memory_space<smem>>, %arg5: memref<4x128xf32, #tpu.memory_space<vmem>>) attributes {dimension_semantics = [#tpu.dimension_semantics<parallel>, #tpu.dimension_semantics<parallel>], iteration_bounds = array<i64: 1, 1>, scalar_prefetch = 0 : i64, scratch_operands = 0 : i64, tpu.core_type = #tpu.core_type<tc>, window_params = [{transform_indices = @transform_0, window_bounds = array<i64: 4, 8, 128>}, {transform_indices = @transform_1, window_bounds = array<i64: 8>}, {transform_indices = @transform_2, window_bounds = array<i64: 1>}, {transform_indices = @transform_3, window_bounds = array<i64: 4, 128>}]} {
    %c0 = arith.constant 0 : index
    %c0_0 = arith.constant 0 : index
    %c0_1 = arith.constant 0 : index
    %0 = vector.load %arg2[%c0, %c0_0, %c0_1] : memref<4x8x128xf32, #tpu.memory_space<vmem>>, vector<4x1x128xf32>
    %1 = vector.shape_cast %0 : vector<4x1x128xf32> to vector<4x128xf32>
    %c0_2 = arith.constant 0 : index
    %2 = memref.load %arg3[%c0_2] : memref<8xf32, #tpu.memory_space<smem>>
    %3 = vector.broadcast %2 : f32 to vector<4x128xf32>
    %4 = arith.mulf %1, %3 : vector<4x128xf32>
    %cst = arith.constant 0.000000e+00 : f32
    %5 = vector.broadcast %cst : f32 to vector<4x128xf32>
    %c0_3 = arith.constant 0 : index
    %c1 = arith.constant 1 : index
    %c0_4 = arith.constant 0 : index
    %6 = vector.load %arg2[%c0_3, %c1, %c0_4] : memref<4x8x128xf32, #tpu.memory_space<vmem>>, vector<4x1x128xf32>
    %7 = vector.shape_cast %6 : vector<4x1x128xf32> to vector<4x128xf32>
    %c1_5 = arith.constant 1 : index
    %8 = memref.load %arg3[%c1_5] : memref<8xf32, #tpu.memory_space<smem>>
    %9 = vector.broadcast %8 : f32 to vector<4x128xf32>
    %10 = arith.mulf %7, %9 : vector<4x128xf32>
    %11 = arith.addf %5, %10 : vector<4x128xf32>
    %c0_6 = arith.constant 0 : index
    %c2 = arith.constant 2 : index
    %c0_7 = arith.constant 0 : index
    %12 = vector.load %arg2[%c0_6, %c2, %c0_7] : memref<4x8x128xf32, #tpu.memory_space<vmem>>, vector<4x1x128xf32>
    %13 = vector.shape_cast %12 : vector<4x1x128xf32> to vector<4x128xf32>
    %c2_8 = arith.constant 2 : index
    %14 = memref.load %arg3[%c2_8] : memref<8xf32, #tpu.memory_space<smem>>
    %15 = vector.broadcast %14 : f32 to vector<4x128xf32>
    %16 = arith.mulf %13, %15 : vector<4x128xf32>
    %17 = arith.addf %4, %16 : vector<4x128xf32>
    %c0_9 = arith.constant 0 : index
    %c3 = arith.constant 3 : index
    %c0_10 = arith.constant 0 : index
    %18 = vector.load %arg2[%c0_9, %c3, %c0_10] : memref<4x8x128xf32, #tpu.memory_space<vmem>>, vector<4x1x128xf32>
    %19 = vector.shape_cast %18 : vector<4x1x128xf32> to vector<4x128xf32>
    %c3_11 = arith.constant 3 : index
    %20 = memref.load %arg3[%c3_11] : memref<8xf32, #tpu.memory_space<smem>>
    %21 = vector.broadcast %20 : f32 to vector<4x128xf32>
    %22 = arith.mulf %19, %21 : vector<4x128xf32>
    %23 = arith.addf %11, %22 : vector<4x128xf32>
    %c0_12 = arith.constant 0 : index
    %c4 = arith.constant 4 : index
    %c0_13 = arith.constant 0 : index
    %24 = vector.load %arg2[%c0_12, %c4, %c0_13] : memref<4x8x128xf32, #tpu.memory_space<vmem>>, vector<4x1x128xf32>
    %25 = vector.shape_cast %24 : vector<4x1x128xf32> to vector<4x128xf32>
    %c4_14 = arith.constant 4 : index
    %26 = memref.load %arg3[%c4_14] : memref<8xf32, #tpu.memory_space<smem>>
    %27 = vector.broadcast %26 : f32 to vector<4x128xf32>
    %28 = arith.mulf %25, %27 : vector<4x128xf32>
    %29 = arith.addf %17, %28 : vector<4x128xf32>
    %c0_15 = arith.constant 0 : index
    %c5 = arith.constant 5 : index
    %c0_16 = arith.constant 0 : index
    %30 = vector.load %arg2[%c0_15, %c5, %c0_16] : memref<4x8x128xf32, #tpu.memory_space<vmem>>, vector<4x1x128xf32>
    %31 = vector.shape_cast %30 : vector<4x1x128xf32> to vector<4x128xf32>
    %c5_17 = arith.constant 5 : index
    %32 = memref.load %arg3[%c5_17] : memref<8xf32, #tpu.memory_space<smem>>
    %33 = vector.broadcast %32 : f32 to vector<4x128xf32>
    %34 = arith.mulf %31, %33 : vector<4x128xf32>
    %35 = arith.addf %23, %34 : vector<4x128xf32>
    %c0_18 = arith.constant 0 : index
    %c6 = arith.constant 6 : index
    %c0_19 = arith.constant 0 : index
    %36 = vector.load %arg2[%c0_18, %c6, %c0_19] : memref<4x8x128xf32, #tpu.memory_space<vmem>>, vector<4x1x128xf32>
    %37 = vector.shape_cast %36 : vector<4x1x128xf32> to vector<4x128xf32>
    %c6_20 = arith.constant 6 : index
    %38 = memref.load %arg3[%c6_20] : memref<8xf32, #tpu.memory_space<smem>>
    %39 = vector.broadcast %38 : f32 to vector<4x128xf32>
    %40 = arith.mulf %37, %39 : vector<4x128xf32>
    %41 = arith.addf %29, %40 : vector<4x128xf32>
    %c0_21 = arith.constant 0 : index
    %c7 = arith.constant 7 : index
    %c0_22 = arith.constant 0 : index
    %42 = vector.load %arg2[%c0_21, %c7, %c0_22] : memref<4x8x128xf32, #tpu.memory_space<vmem>>, vector<4x1x128xf32>
    %43 = vector.shape_cast %42 : vector<4x1x128xf32> to vector<4x128xf32>
    %c7_23 = arith.constant 7 : index
    %44 = memref.load %arg3[%c7_23] : memref<8xf32, #tpu.memory_space<smem>>
    %45 = vector.broadcast %44 : f32 to vector<4x128xf32>
    %46 = arith.mulf %43, %45 : vector<4x128xf32>
    %47 = arith.addf %35, %46 : vector<4x128xf32>
    %48 = arith.addf %41, %47 : vector<4x128xf32>
    %c0_24 = arith.constant 0 : index
    %49 = memref.load %arg4[%c0_24] : memref<1xf32, #tpu.memory_space<smem>>
    %50 = vector.broadcast %49 : f32 to vector<4x128xf32>
    %51 = arith.addf %48, %50 : vector<4x128xf32>
    %52 = arith.negf %51 : vector<4x128xf32>
    %53 = math.exp %52 : vector<4x128xf32>
    %cst_25 = arith.constant 1.000000e+00 : f32
    %54 = vector.broadcast %cst_25 : f32 to vector<4x128xf32>
    %55 = arith.addf %54, %53 : vector<4x128xf32>
    %56 = arith.divf %54, %55 : vector<4x128xf32>
    %c0_26 = arith.constant 0 : index
    %c0_27 = arith.constant 0 : index
    %57 = vector.load %arg5[%c0_26, %c0_27] : memref<4x128xf32, #tpu.memory_space<vmem>>, vector<4x128xf32>
    tpu.vector_store %arg5[%c0_26, %c0_27], %56 {strides = array<i32>} : memref<4x128xf32, #tpu.memory_space<vmem>>, vector<4x128xf32>,
    return
  }
  func.func @transform_0(%arg0: i32, %arg1: i32) -> (i32, i32, i32) {
    %c1_i32 = arith.constant 1 : i32
    %c0_i32 = arith.constant 0 : i32
    return %arg0, %c1_i32, %arg1 : i32, i32, i32
  }
  func.func @transform_1(%arg0: i32, %arg1: i32) -> i32 {
    %c0_i32 = arith.constant 0 : i32
    %c0_i32_0 = arith.constant 0 : i32
    return %c0_i32 : i32
  }
  func.func @transform_2(%arg0: i32, %arg1: i32) -> i32 {
    %c0_i32 = arith.constant 0 : i32
    %c0_i32_0 = arith.constant 0 : i32
    return %c0_i32 : i32
  }
  func.func @transform_3(%arg0: i32, %arg1: i32) -> (i32, i32) {
    %c0_i32 = arith.constant 0 : i32
    return %arg0, %arg1 : i32, i32
  }
}

</mosaic_0001>

<bundles_post_ra>
// kernel: tpu_custom_call.1
= control target key start
LH: loop header
LB: loop body
LE: loop exit
PB: predicated region body
PF: predicated region fallthrough
CT: control target
= control target key end

     0   :  { %9 = vsyncpa [#allocation4], 0  ;;  %s386_s0 = inlined_call_operand.hbm [shape: f32[4,16,128], index: 0, kind: input, shape index: {}]   ;;  %s387_s1 = inlined_call_operand.vmem [shape: f32[8], index: 1, kind: input, shape index: {}]   ;;  %s388_s2 = inlined_call_operand.<no memory space> [shape: f32[1], index: 2, kind: input, shape index: {}]   ;;  %s389_s3 = inlined_call_operand.hbm [shape: f32[4,128], index: 3, kind: output, shape index: {}]  }
   0x1   :  { %10 = vsyncpa [#allocation6], 0 }
   0x2   :  { %11 = vsyncpa [#allocation5], 0  ;;  %s17_s14 = scalar_lea.hbm %s386_s0, 128  ;;  %s315_s15 = smov [#allocation3]  }
   0x3   :  { %s18_s16 = sshll.u32 %s315_s15, 4  ;;  %s31_s19 = sshll.u32 %s387_s1, 4  ;;  %s19_s16 = int_to_ptr.vmem [resolvable:$true] %s18_s16  ;;  %s32_s19 = int_to_ptr.vmem [resolvable:$true] %s31_s19 }
   0x4   :  { %s274_s22 = scalar_lea.hbm %s386_s0, 640  ;;  %s252_s25 = scalar_lea.hbm %s386_s0, 1024 }
   0x5   :  { %p251_p0 = scmp.ne.s32.totalorder %s17_s14, %s274_s22  ;;  %p253_p1 = scmp.lt.u32.totalorder %s17_s14, %s386_s0 }
   0x6   :  { %p254_p2 = scmp.lt.u32.totalorder %s252_s25, %s274_s22  ;;  %p256_p4 = scmp.lt.u32.totalorder %s274_s22, %s17_s14 }
   0x8   :  { %p255_p3 = por %p254_p2, %p253_p1 }
   0xa   :  { %p257_p5 = por %p256_p4, %p255_p3 }
   0xc   :  { %p258_p6 = pnand %p257_p5, %p251_p0 }
   0xe   :  { %261 = shalt.err (!%p258_p6)
}
   0xf   :  { %s262_s1 = scalar_lea.vmem %s19_s16, 512  ;;  %p267_p8 = scmp.lt.s32.totalorder %s19_s16, %s19_s16 }
  0x10   :  { %p263_p7 = scmp.ne.s32.totalorder %s19_s16, %s262_s1  ;;  %p268_p9 = scmp.lt.s32.totalorder %s262_s1, %s262_s1 }
  0x12   :  { %p269_p10 = por %p268_p9, %p267_p8 }
  0x14   :  { %p270_p11 = pnand %p269_p10, %p263_p7 }
  0x16   :  { %273 = shalt.err (!%p270_p11)
}
  0x17   :  { %s316_s28 = smov 256   ;;  %s317_s29 = smov 128  }
  0x18   :  { %s318_s30 = smov 8   ;;  %s275_s4 = scalar_lea.vmem %s32_s19, 16 }
  0x19   :  { %24 = dma.hbm_to_vmem [thread:$0]  %s17_s14, 512, %s19_s16, [#allocation4], %s316_s28, %s317_s29, %s318_s30  }
  0x1a   :  { %p276_p12 = scmp.ne.s32.totalorder %s32_s19, %s275_s4  ;;  %p280_p13 = scmp.lt.s32.totalorder %s32_s19, %s32_s19 }
  0x1b   :  { %p281_p1 = scmp.lt.s32.totalorder %s275_s4, %s275_s4 }
  0x1d   :  { %p282_p2 = por %p281_p1, %p280_p13 }
  0x1f   :  { %p283_p3 = pnand %p282_p2, %p276_p12 }
  0x21   :  { %286 = shalt.err (!%p283_p3)
}
  0x22   :  { %s319_s0 = smov [#allocation7]  }
  0x23   :  { %34 = dma.vmem_to_smem %s32_s19, 16, %s319_s0, [#allocation6]  }
  0x24   :  { %309 = dma.done.wait [#allocation4], 512  }
  0x25   :  { %310 = vsyncadd [#allocation4], 4294966784 }
  0x26   :  { %311 = dma.done.wait [#allocation6], 16  }
  0x27   :  { %312 = vsyncadd [#allocation6], 4294967280 }
  0x28   :  { %43 = sfence }
  0x29   :  { %s48_s5 = sld [smem:[#allocation7]]  ;;  %s217_s6 = sld [smem:[#allocation7 + $0x1]]  ;;  %v44_v0 = vld [vmem:[#allocation3] sm:$0x1]  ;;  %v45_v1 = vld [vmem:[#allocation3 + $0x8] sm:$0x1] }
  0x2a   :  { %s218_s7 = sld [smem:[#allocation7 + $0x2]]  ;;  %s356_s8 = sld [smem:[#allocation7 + $0x3]]  ;;  %v46_v2 = vld [vmem:[#allocation3 + $0x10] sm:$0x1]  ;;  %v47_v3 = vld [vmem:[#allocation3 + $0x18] sm:$0x1] }
  0x2b   :  { %v54_v5 = vld [vmem:[#allocation3 + $0x1] sm:$0x1]  ;;  %v68_v6 = vld [vmem:[#allocation3 + $0x2] sm:$0x1]  ;;  %v69_v7 = vld [vmem:[#allocation3 + $0xa] sm:$0x1] }
  0x2c   :  { %s358_s9 = sld [smem:[#allocation7 + $0x4]]  ;;  %v70_v8 = vld [vmem:[#allocation3 + $0x12] sm:$0x1]  ;;  %v71_v9 = vld [vmem:[#allocation3 + $0x1a] sm:$0x1]  ;;  %s360_s10 = sld [smem:[#allocation7 + $0x5]] }
  0x2d   :  { %v55_v12 = vld [vmem:[#allocation3 + $0x9] sm:$0x1]  ;;  %v56_v13 = vld [vmem:[#allocation3 + $0x11] sm:$0x1]  ;;  %v57_v14 = vld [vmem:[#allocation3 + $0x19] sm:$0x1] }
  0x2e   :  { %v82_v20 = vld [vmem:[#allocation3 + $0x3] sm:$0x1]  ;;  %v83_v25 = vld [vmem:[#allocation3 + $0xb] sm:$0x1]  ;;  %v84_v26 = vld [vmem:[#allocation3 + $0x13] sm:$0x1] }
  0x2f   :  { %v49_v4 = vstv %s48_s5  ;;  %v59_v15 = vstv %s217_s6  ;;  %v85_v27 = vld [vmem:[#allocation3 + $0x1b] sm:$0x1]  ;;  %v96_v32 = vld [vmem:[#allocation3 + $0x4] sm:$0x1]  ;;  %v97_v35 = vld [vmem:[#allocation3 + $0xc] sm:$0x1] }
  0x30   :  { %v50_v10 = vmul.f32 %v49_v4, %v44_v0  ;;  %v51_v11 = vmul.f32 %v49_v4, %v45_v1  ;;  %v52_v16 = vmul.f32 %v49_v4, %v46_v2  ;;  %v53_v17 = vmul.f32 %v49_v4, %v47_v3  ;;  %s363_s11 = sld [smem:[#allocation7 + $0x6]]  ;;  %s365_s12 = sld [smem:[#allocation7 + $0x7]]  ;;  %v98_v40 = vld [vmem:[#allocation3 + $0x14] sm:$0x1]  ;;  %v99_v41 = vld [vmem:[#allocation3 + $0x1c] sm:$0x1] }
  0x31   :  { %v60_v18 = vmul.f32 %v59_v15, %v54_v5  ;;  %v73_v19 = vstv %s218_s7  ;;  %v61_v28 = vmul.f32 %v59_v15, %v55_v12  ;;  %v62_v29 = vmul.f32 %v59_v15, %v56_v13  ;;  %v110_v42 = vld [vmem:[#allocation3 + $0x5] sm:$0x1]  ;;  %v111_v46 = vld [vmem:[#allocation3 + $0xd] sm:$0x1]  ;;  %v112_v47 = vld [vmem:[#allocation3 + $0x15] sm:$0x1] }
  0x32   :  { %v74_v21 = vmul.f32 %v73_v19, %v68_v6  ;;  %v75_v22 = vmul.f32 %v73_v19, %v69_v7  ;;  %v76_v23 = vmul.f32 %v73_v19, %v70_v8  ;;  %v77_v24 = vmul.f32 %v73_v19, %v71_v9  ;;  %v113_v48 = vld [vmem:[#allocation3 + $0x1d] sm:$0x1]  ;;  %v124_v62 = vld [vmem:[#allocation3 + $0x6] sm:$0x1]  ;;  %v125_v63 = vld [vmem:[#allocation3 + $0xe] sm:$0x1] }
  0x33   :  { %v63_v30 = vmul.f32 %v59_v15, %v57_v14  ;;  %v87_v31 = vstv %s356_s8  ;;  %v101_v45 = vstv %s358_s9  ;;  %v115_v49 = vstv %s360_s10  ;;  %v126_v2 = vld [vmem:[#allocation3 + $0x16] sm:$0x1]  ;;  %v127_v3 = vld [vmem:[#allocation3 + $0x1e] sm:$0x1]  ;;  %v138_v4 = vld [vmem:[#allocation3 + $0x7] sm:$0x1] }
  0x34   :  { %v78_v33 = vadd.f32 %v74_v21, %v50_v10  ;;  %v79_v34 = vadd.f32 %v75_v22, %v51_v11  ;;  %v88_v36 = vmul.f32 %v87_v31, %v82_v20  ;;  %v89_v37 = vmul.f32 %v87_v31, %v83_v25  ;;  %v139_v9 = vld [vmem:[#allocation3 + $0xf] sm:$0x1]  ;;  %v140_v10 = vld [vmem:[#allocation3 + $0x17] sm:$0x1]  ;;  %v141_v11 = vld [vmem:[#allocation3 + $0x1f] sm:$0x1] }
  0x35   :  { %v90_v38 = vmul.f32 %v87_v31, %v84_v26  ;;  %v91_v39 = vmul.f32 %v87_v31, %v85_v27  ;;  %v80_v43 = vadd.f32 %v76_v23, %v52_v16  ;;  %v81_v44 = vadd.f32 %v77_v24, %v53_v17 }
  0x36   :  { %v92_v50 = vadd.f32 %v88_v36, %v60_v18  ;;  %v93_v51 = vadd.f32 %v89_v37, %v61_v28  ;;  %v102_v54 = vmul.f32 %v101_v45, %v96_v32  ;;  %v103_v55 = vmul.f32 %v101_v45, %v97_v35 }
  0x37   :  { %v94_v52 = vadd.f32 %v90_v38, %v62_v29  ;;  %v95_v53 = vadd.f32 %v91_v39, %v63_v30  ;;  %v104_v56 = vmul.f32 %v101_v45, %v98_v40  ;;  %v105_v57 = vmul.f32 %v101_v45, %v99_v41 }
  0x38   :  { %v116_v58 = vmul.f32 %v115_v49, %v110_v42  ;;  %v117_v59 = vmul.f32 %v115_v49, %v111_v46  ;;  %v118_v60 = vmul.f32 %v115_v49, %v112_v47  ;;  %v119_v61 = vmul.f32 %v115_v49, %v113_v48 }
  0x39   :  { %v106_v0 = vadd.f32 %v102_v54, %v78_v33  ;;  %v107_v1 = vadd.f32 %v103_v55, %v79_v34  ;;  %v108_v5 = vadd.f32 %v104_v56, %v80_v43  ;;  %v109_v6 = vadd.f32 %v105_v57, %v81_v44 }
  0x3a   :  { %v120_v7 = vadd.f32 %v116_v58, %v92_v50  ;;  %v121_v8 = vadd.f32 %v117_v59, %v93_v51  ;;  %v122_v12 = vadd.f32 %v118_v60, %v94_v52  ;;  %v123_v13 = vadd.f32 %v119_v61, %v95_v53 }
  0x3b   :  { %v129_v14 = vstv %s363_s11  ;;  %v143_v15 = vstv %s365_s12  ;;  %v157_v32 = vstv %s388_s2  ;;  %vm191_vm0 = vcmask 1041409   ;;  %s320_s2 = smov [#allocation8]  }
  0x3c   :  { %v130_v16 = vmul.f32 %v129_v14, %v124_v62  ;;  %v131_v17 = vmul.f32 %v129_v14, %v125_v63  ;;  %v132_v18 = vmul.f32 %v129_v14, %v126_v2  ;;  %v133_v19 = vmul.f32 %v129_v14, %v127_v3  ;;  %s207_s15 = sshll.u32 %s320_s2, 4  ;;  %s208_s15 = int_to_ptr.vmem [resolvable:$true] %s207_s15 }
  0x3d   :  { %v144_v20 = vmul.f32 %v143_v15, %v138_v4  ;;  %v145_v21 = vmul.f32 %v143_v15, %v139_v9  ;;  %v146_v22 = vmul.f32 %v143_v15, %v140_v10  ;;  %v147_v23 = vmul.f32 %v143_v15, %v141_v11  ;;  %s287_s16 = scalar_lea.vmem %s208_s15, 64  ;;  %p292_p4 = scmp.lt.s32.totalorder %s208_s15, %s208_s15 }
  0x3e   :  { %v134_v24 = vadd.f32 %v130_v16, %v106_v0  ;;  %v135_v25 = vadd.f32 %v131_v17, %v107_v1  ;;  %v136_v26 = vadd.f32 %v132_v18, %v108_v5  ;;  %v137_v27 = vadd.f32 %v133_v19, %v109_v6  ;;  %p288_p0 = scmp.ne.s32.totalorder %s208_s15, %s287_s16  ;;  %p293_p5 = scmp.lt.s32.totalorder %s287_s16, %s287_s16 }
  0x3f   :  { %v148_v28 = vadd.f32 %v144_v20, %v120_v7  ;;  %v149_v29 = vadd.f32 %v145_v21, %v121_v8  ;;  %v150_v30 = vadd.f32 %v146_v22, %v122_v12  ;;  %v151_v31 = vadd.f32 %v147_v23, %v123_v13 }
  0x40   :  { %vm194_vm1 = vcmask 1042434   ;;  %vm197_vm2 = vcmask 1043459   ;;  %p294_p6 = por %p293_p5, %p292_p4 }
  0x41   :  { %v152_v33 = vadd.f32 %v148_v28, %v134_v24  ;;  %v153_v34 = vadd.f32 %v149_v29, %v135_v25  ;;  %v154_v35 = vadd.f32 %v150_v30, %v136_v26  ;;  %v155_v36 = vadd.f32 %v151_v31, %v137_v27 }
  0x42   :  { %p295_p7 = pnand %p294_p6, %p288_p0 }
  0x43   :  { %v158_v37 = vadd.f32 %v157_v32, %v152_v33  ;;  %v159_v38 = vadd.f32 %v157_v32, %v153_v34  ;;  %v160_v39 = vadd.f32 %v157_v32, %v154_v35  ;;  %v161_v40 = vadd.f32 %v157_v32, %v155_v36 }
  0x45   :  { %v224_v41 = vmul.f32 -1.442695, %v158_v37  ;;  %v225_v42 = vmul.f32 -1.442695, %v159_v38  ;;  %v226_v43 = vmul.f32 -1.442695, %v160_v39 }
  0x46   :  { %v227_v44 = vmul.f32 -1.442695, %v161_v40 }
  0x47   :  { %234 = vpow2.f32 %v224_v41 }
  0x48   :  { %236 = vpow2.f32 %v225_v42 }
  0x49   :  { %238 = vpow2.f32 %v226_v43 }
  0x4a   :  { %240 = vpow2.f32 %v227_v44 }
  0x51   :  { %v235_v45 = vpop.eup %234 }
  0x52   :  { %v237_v46 = vpop.eup %236  ;;  %v174_v47 = vadd.f32 1.0, %v235_v45 }
  0x53   :  { %v239_v48 = vpop.eup %238  ;;  %v175_v49 = vadd.f32 1.0, %v237_v46 }
  0x54   :  { %v241_v50 = vpop.eup %240  ;;  %v176_v51 = vadd.f32 1.0, %v239_v48  ;;  %242 = vrcp.f32 %v174_v47 }
  0x55   :  { %v177_v52 = vadd.f32 1.0, %v241_v50  ;;  %244 = vrcp.f32 %v175_v49 }
  0x56   :  { %246 = vrcp.f32 %v176_v51 }
  0x57   :  { %248 = vrcp.f32 %v177_v52 }
  0x5e   :  { %v243_v53 = vpop.eup %242 }
  0x5f   :  { %v245_v54 = vpop.eup %244 }
  0x60   :  { %v247_v55 = vpop.eup %246  ;;  %v190_v56 = vrot.slane %v245_v54, 7 }
  0x61   :  { %v249_v57 = vpop.eup %248  ;;  %v193_v58 = vrot.slane %v247_v55, 6 }
  0x62   :  { %v192_v59 = vsel %vm191_vm0, %v190_v56, %v243_v53  ;;  %v196_v60 = vrot.slane %v249_v57, 5 }
  0x63   :  { %v195_v61 = vsel %vm194_vm1, %v193_v58, %v192_v59 }
  0x64   :  { %v198_v62 = vsel %vm197_vm2, %v196_v60, %v195_v61 }
  0x65   :  { %200 = vst [vmem:[#allocation8] sm:$0xf] %v198_v62 }
  0x66   :  { %298 = shalt.err (!%p295_p7)
}
  0x67   :  { %s299_s19 = scalar_lea.hbm %s389_s3, 64 }
  0x68   :  { %p300_p8 = scmp.ne.s32.totalorder %s389_s3, %s299_s19  ;;  %p303_p9 = scmp.lt.u32.totalorder %s299_s19, %s389_s3 }
  0x6a   :  { %p305_p10 = pnand %p303_p9, %p300_p8 }
  0x6c   :  { %308 = shalt.err (!%p305_p10)
}
  0x6d   :  { %210 = dma.vmem_to_hbm [thread:$0]  %s208_s15, 64, %s389_s3, [#allocation5]  }
  0x6e   :  { %313 = dma.done.wait [#allocation5], 64  }
  0x6f   :  { %314 = vsyncadd [#allocation5], 4294967232 }
  0x70   :  { %214 = vsyncpa [#allocation4], 1 }
  0x71   :  { %215 = vsyncpa [#allocation5], 1 }
  0x72   :  { %216 = vsyncpa [#allocation6], 1 }

</bundles_post_ra>
